<compile_context>
chip_gen: v7x
topology: tpu7x:2x2x1
jax: 0.10.0
libtpu: 0.0.40
codegen_flags: <defaults>
</compile_context>

<pallas_src>
import functools

import jax
import jax.numpy as jnp
from jax.experimental import pallas as pl
from jax.experimental.pallas import tpu as pltpu


def _lstm_tagger_kernel(x_ref, w_ref, b_ref, out_ref, *,
                        input_dim, hidden_dim, tag_dim):
    """Whole forward pass in one kernel (tiny shapes; everything in VMEM).

    x_ref:   (S, D)        bf16  input sequence
    w_ref:   (D+2H, 4H)    bf16  packed weights:
                                   rows [0, D)      : w_ih^T   (gate order i,f,o,g; g-cols pre-scaled by 2)
                                   rows [D, D+H)    : w_hh^T   (same layout)
                                   rows [D+H, D+2H) : w_out^T padded to 4H lanes (first T cols valid)
    b_ref:   (2, 4H)       f32   row 0: combined gate bias (i,f,o,2*g)
                                 row 1: hidden2tag bias padded to 4H (first T cols valid)
    out_ref: (S, T)        f32   softmax(tag_space, dim=0)
    """
    S = x_ref.shape[0]
    D, H, T = input_dim, hidden_dim, tag_dim

    w_ih = w_ref[0:D, :]                           # (D, 4H) bf16
    w_hh = w_ref[D:D + H, :]                       # (H, 4H) bf16
    w_out = w_ref[D + H:D + 2 * H, 0:T]            # (H, T)  bf16
    b = b_ref[0:1, :]                              # (1, 4H) f32
    b_out = b_ref[1:2, 0:T]                        # (1, T)  f32

    # Input-side gate pre-activations for every timestep at once (one MXU op).
    xg = jnp.dot(x_ref[...], w_ih,
                 preferred_element_type=jnp.float32) + b          # (S, 4H) f32

    h_bf = jnp.zeros((1, H), jnp.bfloat16)
    c = jnp.zeros((1, H), jnp.float32)
    h_rows = []

    # Fully unrolled serial recurrence: static slices only, (1,H) h/c live.
    for t in range(S):
        gates = xg[t:t + 1, :] + jnp.dot(h_bf, w_hh,
                                         preferred_element_type=jnp.float32)  # (1,4H)
        # g-block was pre-scaled by 2 host-side, so ONE wide sigmoid covers all
        # four gates: i,f,o directly, and tanh(g) = 2*sigmoid(2g) - 1.
        s = jax.nn.sigmoid(gates)                                  # (1, 4H)
        i_g = s[:, 0:H]
        f_g = s[:, H:2 * H]
        o_g = s[:, 2 * H:3 * H]
        g_g = 2.0 * s[:, 3 * H:4 * H] - 1.0                        # == tanh(pre_g)
        c = f_g * c + i_g * g_g
        h_bf = (o_g * jnp.tanh(c)).astype(jnp.bfloat16)            # one cast/step
        h_rows.append(h_bf)                                        # stays in vregs

    lstm_out = jnp.concatenate(h_rows, axis=0)                     # (S, H) bf16

    # hidden2tag: Linear(H -> T) on lstm_out.view(S, -1)
    tag_space = jnp.dot(lstm_out, w_out,
                        preferred_element_type=jnp.float32) + b_out  # (S, T) f32

    # F.softmax(tag_space, dim=0): softmax over the sequence dimension.
    m = jnp.max(tag_space, axis=0, keepdims=True)
    e = jnp.exp(tag_space - m)
    inv = pl.reciprocal(jnp.sum(e, axis=0, keepdims=True), approx=True)
    out_ref[...] = e * inv


def _prep_gate_matrix(w):
    """PyTorch (4H, K) gate matrix -> (K, 4H), gate order (i,f,o,g), g-block *2."""
    i, f, g, o = jnp.split(w, 4, axis=0)
    return jnp.concatenate([i, f, o, 2.0 * g], axis=0).T


def _prep_gate_bias(b):
    """PyTorch (4H,) combined bias -> (1, 4H), gate order (i,f,o,g), g-block *2."""
    i, f, g, o = jnp.split(b, 4, axis=0)
    return jnp.concatenate([i, f, o, 2.0 * g], axis=0).reshape(1, -1)


def lstm_tagger_forward(sentence, params):
    """sentence: (S, 1, D) float32 (time-major, batch=1). Returns (S, output_dim)."""
    S, B, D = sentence.shape
    assert B == 1, "LSTMTagger uses batch size 1 (hidden is (1,1,H))"
    w_ih, w_hh, b_ih, b_hh, w_out, b_out = (
        params["w_ih"], params["w_hh"], params["b_ih"],
        params["b_hh"], params["w_out"], params["b_out"])
    H = w_hh.shape[1]
    T = w_out.shape[0]
    G = 4 * H
    assert T <= G, "tag dim must fit in the 4H-wide packed slabs"

    # Layout + dtype prep (host-side, off the kernel's critical path).
    x2 = sentence.reshape(S, D).astype(jnp.bfloat16)                       # (S, D)

    w_ih_t = _prep_gate_matrix(w_ih).astype(jnp.bfloat16)                  # (D, 4H)
    w_hh_t = _prep_gate_matrix(w_hh).astype(jnp.bfloat16)                  # (H, 4H)
    w_out_pad = jnp.zeros((H, G), jnp.bfloat16).at[:, :T].set(
        w_out.T.astype(jnp.bfloat16))                                      # (H, 4H)
    w_slab = jnp.concatenate([w_ih_t, w_hh_t, w_out_pad], axis=0)          # (D+2H, 4H)

    b_gates = _prep_gate_bias((b_ih + b_hh).astype(jnp.float32))           # (1, 4H)
    b_out_pad = jnp.zeros((1, G), jnp.float32).at[:, :T].set(
        b_out.reshape(1, T).astype(jnp.float32))                           # (1, 4H)
    b_slab = jnp.concatenate([b_gates, b_out_pad], axis=0)                 # (2, 4H)

    kernel = functools.partial(_lstm_tagger_kernel,
                               input_dim=D, hidden_dim=H, tag_dim=T)
    vmem = pl.BlockSpec(memory_space=pltpu.MemorySpace.VMEM)
    return pl.pallas_call(
        kernel,
        out_shape=jax.ShapeDtypeStruct((S, T), jnp.float32),
        in_specs=[vmem, vmem, vmem],
        out_specs=vmem,
    )(x2, w_slab, b_slab)


def init_params(key, input_dim, hidden_dim, output_dim):
    """Deterministic init mimicking PyTorch's uniform(-1/sqrt(H), 1/sqrt(H))."""
    k = 1.0 / jnp.sqrt(jnp.float32(hidden_dim))
    keys = jax.random.split(key, 6)
    u = lambda kk, shape: jax.random.uniform(kk, shape, jnp.float32, -k, k)
    return {
        "w_ih": u(keys[0], (4 * hidden_dim, input_dim)),   # PyTorch gate order i,f,g,o
        "w_hh": u(keys[1], (4 * hidden_dim, hidden_dim)),
        "b_ih": u(keys[2], (4 * hidden_dim,)),
        "b_hh": u(keys[3], (4 * hidden_dim,)),
        "w_out": u(keys[4], (output_dim, hidden_dim)),
        "b_out": u(keys[5], (output_dim,)),
    }


def _reference_forward(sentence, params):
    """Pure-JAX reference mirroring the kernel's bf16 matmul casts."""
    S, B, D = sentence.shape
    w_ih, w_hh = params["w_ih"], params["w_hh"]
    b = (params["b_ih"] + params["b_hh"]).astype(jnp.float32)
    H = w_hh.shape[1]
    x = sentence.reshape(S, D).astype(jnp.bfloat16)
    w_ih_t = w_ih.T.astype(jnp.bfloat16)
    w_hh_t = w_hh.T.astype(jnp.bfloat16)
    xg = jnp.dot(x, w_ih_t, preferred_element_type=jnp.float32) + b[None, :]

    def step(carry, g_x):
        h, c = carry
        gates = g_x[None, :] + jnp.dot(h.astype(jnp.bfloat16), w_hh_t,
                                       preferred_element_type=jnp.float32)
        i_g = jax.nn.sigmoid(gates[:, 0:H])
        f_g = jax.nn.sigmoid(gates[:, H:2 * H])
        g_g = jnp.tanh(gates[:, 2 * H:3 * H])
        o_g = jax.nn.sigmoid(gates[:, 3 * H:4 * H])
        c = f_g * c + i_g * g_g
        h = o_g * jnp.tanh(c)
        return (h, c), h[0]

    h0 = jnp.zeros((1, H), jnp.float32)
    c0 = jnp.zeros((1, H), jnp.float32)
    _, lstm_out = jax.lax.scan(step, (h0, c0), xg)
    tag_space = jnp.dot(lstm_out.astype(jnp.bfloat16),
                        params["w_out"].T.astype(jnp.bfloat16),
                        preferred_element_type=jnp.float32) + params["b_out"][None, :]
    return jax.nn.softmax(tag_space, axis=0)


if __name__ == "__main__":
    SEQ, INPUT_DIM, HIDDEN_DIM, OUTPUT_DIM = 8, 16, 32, 8

    key = jax.random.PRNGKey(0)
    k_x, k_p = jax.random.split(key)
    sentence = jax.random.normal(k_x, (SEQ, 1, INPUT_DIM), jnp.float32)
    params = init_params(k_p, INPUT_DIM, HIDDEN_DIM, OUTPUT_DIM)

    tag_scores = lstm_tagger_forward(sentence, params)
    jax.block_until_ready(tag_scores)

    assert tag_scores.shape == (SEQ, OUTPUT_DIM)
    # softmax is over dim 0 -> columns sum to 1 (approx rcp => looser tolerance)
    assert bool(jnp.allclose(jnp.sum(tag_scores, axis=0), 1.0, atol=1e-2))
    # cross-check against a pure-JAX reference with matching bf16 casts
    ref = _reference_forward(sentence, params)
    assert bool(jnp.allclose(tag_scores, ref, atol=5e-3))
    print("KERNEL_OK")
</pallas_src>

<mosaic_0001>
module attributes {stable_mosaic.version = 11 : i64} {
  func.func @_lstm_tagger_kernel(%arg0: memref<8x16xbf16, #tpu.memory_space<vmem>>, %arg1: memref<80x128xbf16, #tpu.memory_space<vmem>>, %arg2: memref<2x128xf32, #tpu.memory_space<vmem>>, %arg3: memref<8x8xf32, #tpu.memory_space<vmem>>) attributes {dimension_semantics = [], scalar_prefetch = 0 : i64, scratch_operands = 0 : i64, tpu.core_type = #tpu.core_type<tc>} {
    %c0 = arith.constant 0 : index
    %c0_0 = arith.constant 0 : index
    %0 = vector.load %arg1[%c0, %c0_0] : memref<80x128xbf16, #tpu.memory_space<vmem>>, vector<16x128xbf16>
    %c16 = arith.constant 16 : index
    %c0_1 = arith.constant 0 : index
    %1 = vector.load %arg1[%c16, %c0_1] : memref<80x128xbf16, #tpu.memory_space<vmem>>, vector<32x128xbf16>
    %c48 = arith.constant 48 : index
    %c0_2 = arith.constant 0 : index
    %2 = vector.load %arg1[%c48, %c0_2] : memref<80x128xbf16, #tpu.memory_space<vmem>>, vector<32x8xbf16>
    %c0_3 = arith.constant 0 : index
    %c0_4 = arith.constant 0 : index
    %3 = vector.load %arg2[%c0_3, %c0_4] : memref<2x128xf32, #tpu.memory_space<vmem>>, vector<1x128xf32>
    %c1 = arith.constant 1 : index
    %c0_5 = arith.constant 0 : index
    %4 = vector.load %arg2[%c1, %c0_5] : memref<2x128xf32, #tpu.memory_space<vmem>>, vector<1x8xf32>
    %c0_6 = arith.constant 0 : index
    %c0_7 = arith.constant 0 : index
    %5 = vector.load %arg0[%c0_6, %c0_7] : memref<8x16xbf16, #tpu.memory_space<vmem>>, vector<8x16xbf16>
    %cst = arith.constant dense<0.000000e+00> : vector<8x128xf32>
    %6 = tpu.matmul %5, %0, %cst {dimension_numbers = #tpu.dot_dimension_numbers<[1], [0], [0], [1], [0, 0, 1, 1], [], []>} : vector<8x16xbf16>, vector<16x128xbf16>, vector<8x128xf32> -> vector<8x128xf32>
    %7 = vector.broadcast %3 : vector<1x128xf32> to vector<8x128xf32>
    %8 = arith.addf %6, %7 : vector<8x128xf32>
    %cst_8 = arith.constant 0.000000e+00 : bf16
    %9 = vector.broadcast %cst_8 : bf16 to vector<1x32xbf16>
    %cst_9 = arith.constant 0.000000e+00 : f32
    %10 = vector.broadcast %cst_9 : f32 to vector<1x32xf32>
    %11 = vector.extract_strided_slice %8 {offsets = [0, 0], sizes = [1, 128], strides = [1, 1]} : vector<8x128xf32> to vector<1x128xf32>
    %cst_10 = arith.constant dense<0.000000e+00> : vector<1x128xf32>
    %12 = tpu.matmul %9, %1, %cst_10 {dimension_numbers = #tpu.dot_dimension_numbers<[1], [0], [0], [1], [0, 0, 1, 1], [], []>} : vector<1x32xbf16>, vector<32x128xbf16>, vector<1x128xf32> -> vector<1x128xf32>
    %13 = arith.addf %11, %12 : vector<1x128xf32>
    %14 = arith.negf %13 : vector<1x128xf32>
    %15 = math.exp %14 : vector<1x128xf32>
    %cst_11 = arith.constant 1.000000e+00 : f32
    %16 = vector.broadcast %cst_11 : f32 to vector<1x128xf32>
    %17 = arith.addf %16, %15 : vector<1x128xf32>
    %18 = arith.divf %16, %17 : vector<1x128xf32>
    %19 = vector.extract_strided_slice %18 {offsets = [0, 0], sizes = [1, 32], strides = [1, 1]} : vector<1x128xf32> to vector<1x32xf32>
    %20 = vector.extract_strided_slice %18 {offsets = [0, 32], sizes = [1, 32], strides = [1, 1]} : vector<1x128xf32> to vector<1x32xf32>
    %21 = vector.extract_strided_slice %18 {offsets = [0, 64], sizes = [1, 32], strides = [1, 1]} : vector<1x128xf32> to vector<1x32xf32>
    %22 = vector.extract_strided_slice %18 {offsets = [0, 96], sizes = [1, 32], strides = [1, 1]} : vector<1x128xf32> to vector<1x32xf32>
    %cst_12 = arith.constant 2.000000e+00 : f32
    %23 = vector.broadcast %cst_12 : f32 to vector<1x32xf32>
    %24 = arith.mulf %23, %22 : vector<1x32xf32>
    %cst_13 = arith.constant 1.000000e+00 : f32
    %25 = vector.broadcast %cst_13 : f32 to vector<1x32xf32>
    %26 = arith.subf %24, %25 : vector<1x32xf32>
    %27 = arith.mulf %20, %10 : vector<1x32xf32>
    %28 = arith.mulf %19, %26 : vector<1x32xf32>
    %29 = arith.addf %27, %28 : vector<1x32xf32>
    %30 = math.tanh %29 : vector<1x32xf32>
    %31 = arith.mulf %21, %30 : vector<1x32xf32>
    %32 = arith.truncf %31 : vector<1x32xf32> to vector<1x32xbf16>
    %33 = vector.extract_strided_slice %8 {offsets = [1, 0], sizes = [1, 128], strides = [1, 1]} : vector<8x128xf32> to vector<1x128xf32>
    %cst_14 = arith.constant dense<0.000000e+00> : vector<1x128xf32>
    %34 = tpu.matmul %32, %1, %cst_14 {dimension_numbers = #tpu.dot_dimension_numbers<[1], [0], [0], [1], [0, 0, 1, 1], [], []>} : vector<1x32xbf16>, vector<32x128xbf16>, vector<1x128xf32> -> vector<1x128xf32>
    %35 = arith.addf %33, %34 : vector<1x128xf32>
    %36 = arith.negf %35 : vector<1x128xf32>
    %37 = math.exp %36 : vector<1x128xf32>
    %cst_15 = arith.constant 1.000000e+00 : f32
    %38 = vector.broadcast %cst_15 : f32 to vector<1x128xf32>
    %39 = arith.addf %38, %37 : vector<1x128xf32>
    %40 = arith.divf %38, %39 : vector<1x128xf32>
    %41 = vector.extract_strided_slice %40 {offsets = [0, 0], sizes = [1, 32], strides = [1, 1]} : vector<1x128xf32> to vector<1x32xf32>
    %42 = vector.extract_strided_slice %40 {offsets = [0, 32], sizes = [1, 32], strides = [1, 1]} : vector<1x128xf32> to vector<1x32xf32>
    %43 = vector.extract_strided_slice %40 {offsets = [0, 64], sizes = [1, 32], strides = [1, 1]} : vector<1x128xf32> to vector<1x32xf32>
    %44 = vector.extract_strided_slice %40 {offsets = [0, 96], sizes = [1, 32], strides = [1, 1]} : vector<1x128xf32> to vector<1x32xf32>
    %cst_16 = arith.constant 2.000000e+00 : f32
    %45 = vector.broadcast %cst_16 : f32 to vector<1x32xf32>
    %46 = arith.mulf %45, %44 : vector<1x32xf32>
    %cst_17 = arith.constant 1.000000e+00 : f32
    %47 = vector.broadcast %cst_17 : f32 to vector<1x32xf32>
    %48 = arith.subf %46, %47 : vector<1x32xf32>
    %49 = arith.mulf %42, %29 : vector<1x32xf32>
    %50 = arith.mulf %41, %48 : vector<1x32xf32>
    %51 = arith.addf %49, %50 : vector<1x32xf32>
    %52 = math.tanh %51 : vector<1x32xf32>
    %53 = arith.mulf %43, %52 : vector<1x32xf32>
    %54 = arith.truncf %53 : vector<1x32xf32> to vector<1x32xbf16>
    %55 = vector.extract_strided_slice %8 {offsets = [2, 0], sizes = [1, 128], strides = [1, 1]} : vector<8x128xf32> to vector<1x128xf32>
    %cst_18 = arith.constant dense<0.000000e+00> : vector<1x128xf32>
    %56 = tpu.matmul %54, %1, %cst_18 {dimension_numbers = #tpu.dot_dimension_numbers<[1], [0], [0], [1], [0, 0, 1, 1], [], []>} : vector<1x32xbf16>, vector<32x128xbf16>, vector<1x128xf32> -> vector<1x128xf32>
    %57 = arith.addf %55, %56 : vector<1x128xf32>
    %58 = arith.negf %57 : vector<1x128xf32>
    %59 = math.exp %58 : vector<1x128xf32>
    %cst_19 = arith.constant 1.000000e+00 : f32
    %60 = vector.broadcast %cst_19 : f32 to vector<1x128xf32>
    %61 = arith.addf %60, %59 : vector<1x128xf32>
    %62 = arith.divf %60, %61 : vector<1x128xf32>
    %63 = vector.extract_strided_slice %62 {offsets = [0, 0], sizes = [1, 32], strides = [1, 1]} : vector<1x128xf32> to vector<1x32xf32>
    %64 = vector.extract_strided_slice %62 {offsets = [0, 32], sizes = [1, 32], strides = [1, 1]} : vector<1x128xf32> to vector<1x32xf32>
    %65 = vector.extract_strided_slice %62 {offsets = [0, 64], sizes = [1, 32], strides = [1, 1]} : vector<1x128xf32> to vector<1x32xf32>
    %66 = vector.extract_strided_slice %62 {offsets = [0, 96], sizes = [1, 32], strides = [1, 1]} : vector<1x128xf32> to vector<1x32xf32>
    %cst_20 = arith.constant 2.000000e+00 : f32
    %67 = vector.broadcast %cst_20 : f32 to vector<1x32xf32>
    %68 = arith.mulf %67, %66 : vector<1x32xf32>
    %cst_21 = arith.constant 1.000000e+00 : f32
    %69 = vector.broadcast %cst_21 : f32 to vector<1x32xf32>
    %70 = arith.subf %68, %69 : vector<1x32xf32>
    %71 = arith.mulf %64, %51 : vector<1x32xf32>
    %72 = arith.mulf %63, %70 : vector<1x32xf32>
    %73 = arith.addf %71, %72 : vector<1x32xf32>
    %74 = math.tanh %73 : vector<1x32xf32>
    %75 = arith.mulf %65, %74 : vector<1x32xf32>
    %76 = arith.truncf %75 : vector<1x32xf32> to vector<1x32xbf16>
    %77 = vector.extract_strided_slice %8 {offsets = [3, 0], sizes = [1, 128], strides = [1, 1]} : vector<8x128xf32> to vector<1x128xf32>
    %cst_22 = arith.constant dense<0.000000e+00> : vector<1x128xf32>
    %78 = tpu.matmul %76, %1, %cst_22 {dimension_numbers = #tpu.dot_dimension_numbers<[1], [0], [0], [1], [0, 0, 1, 1], [], []>} : vector<1x32xbf16>, vector<32x128xbf16>, vector<1x128xf32> -> vector<1x128xf32>
    %79 = arith.addf %77, %78 : vector<1x128xf32>
    %80 = arith.negf %79 : vector<1x128xf32>
    %81 = math.exp %80 : vector<1x128xf32>
    %cst_23 = arith.constant 1.000000e+00 : f32
    %82 = vector.broadcast %cst_23 : f32 to vector<1x128xf32>
    %83 = arith.addf %82, %81 : vector<1x128xf32>
    %84 = arith.divf %82, %83 : vector<1x128xf32>
    %85 = vector.extract_strided_slice %84 {offsets = [0, 0], sizes = [1, 32], strides = [1, 1]} : vector<1x128xf32> to vector<1x32xf32>
    %86 = vector.extract_strided_slice %84 {offsets = [0, 32], sizes = [1, 32], strides = [1, 1]} : vector<1x128xf32> to vector<1x32xf32>
    %87 = vector.extract_strided_slice %84 {offsets = [0, 64], sizes = [1, 32], strides = [1, 1]} : vector<1x128xf32> to vector<1x32xf32>
    %88 = vector.extract_strided_slice %84 {offsets = [0, 96], sizes = [1, 32], strides = [1, 1]} : vector<1x128xf32> to vector<1x32xf32>
    %cst_24 = arith.constant 2.000000e+00 : f32
    %89 = vector.broadcast %cst_24 : f32 to vector<1x32xf32>
    %90 = arith.mulf %89, %88 : vector<1x32xf32>
    %cst_25 = arith.constant 1.000000e+00 : f32
    %91 = vector.broadcast %cst_25 : f32 to vector<1x32xf32>
    %92 = arith.subf %90, %91 : vector<1x32xf32>
    %93 = arith.mulf %86, %73 : vector<1x32xf32>
    %94 = arith.mulf %85, %92 : vector<1x32xf32>
    %95 = arith.addf %93, %94 : vector<1x32xf32>
    %96 = math.tanh %95 : vector<1x32xf32>
    %97 = arith.mulf %87, %96 : vector<1x32xf32>
    %98 = arith.truncf %97 : vector<1x32xf32> to vector<1x32xbf16>
    %99 = vector.extract_strided_slice %8 {offsets = [4, 0], sizes = [1, 128], strides = [1, 1]} : vector<8x128xf32> to vector<1x128xf32>
    %cst_26 = arith.constant dense<0.000000e+00> : vector<1x128xf32>
    %100 = tpu.matmul %98, %1, %cst_26 {dimension_numbers = #tpu.dot_dimension_numbers<[1], [0], [0], [1], [0, 0, 1, 1], [], []>} : vector<1x32xbf16>, vector<32x128xbf16>, vector<1x128xf32> -> vector<1x128xf32>
    %101 = arith.addf %99, %100 : vector<1x128xf32>
    %102 = arith.negf %101 : vector<1x128xf32>
    %103 = math.exp %102 : vector<1x128xf32>
    %cst_27 = arith.constant 1.000000e+00 : f32
    %104 = vector.broadcast %cst_27 : f32 to vector<1x128xf32>
    %105 = arith.addf %104, %103 : vector<1x128xf32>
    %106 = arith.divf %104, %105 : vector<1x128xf32>
    %107 = vector.extract_strided_slice %106 {offsets = [0, 0], sizes = [1, 32], strides = [1, 1]} : vector<1x128xf32> to vector<1x32xf32>
    %108 = vector.extract_strided_slice %106 {offsets = [0, 32], sizes = [1, 32], strides = [1, 1]} : vector<1x128xf32> to vector<1x32xf32>
    %109 = vector.extract_strided_slice %106 {offsets = [0, 64], sizes = [1, 32], strides = [1, 1]} : vector<1x128xf32> to vector<1x32xf32>
    %110 = vector.extract_strided_slice %106 {offsets = [0, 96], sizes = [1, 32], strides = [1, 1]} : vector<1x128xf32> to vector<1x32xf32>
    %cst_28 = arith.constant 2.000000e+00 : f32
    %111 = vector.broadcast %cst_28 : f32 to vector<1x32xf32>
    %112 = arith.mulf %111, %110 : vector<1x32xf32>
    %cst_29 = arith.constant 1.000000e+00 : f32
    %113 = vector.broadcast %cst_29 : f32 to vector<1x32xf32>
    %114 = arith.subf %112, %113 : vector<1x32xf32>
    %115 = arith.mulf %108, %95 : vector<1x32xf32>
    %116 = arith.mulf %107, %114 : vector<1x32xf32>
    %117 = arith.addf %115, %116 : vector<1x32xf32>
    %118 = math.tanh %117 : vector<1x32xf32>
    %119 = arith.mulf %109, %118 : vector<1x32xf32>
    %120 = arith.truncf %119 : vector<1x32xf32> to vector<1x32xbf16>
    %121 = vector.extract_strided_slice %8 {offsets = [5, 0], sizes = [1, 128], strides = [1, 1]} : vector<8x128xf32> to vector<1x128xf32>
    %cst_30 = arith.constant dense<0.000000e+00> : vector<1x128xf32>
    %122 = tpu.matmul %120, %1, %cst_30 {dimension_numbers = #tpu.dot_dimension_numbers<[1], [0], [0], [1], [0, 0, 1, 1], [], []>} : vector<1x32xbf16>, vector<32x128xbf16>, vector<1x128xf32> -> vector<1x128xf32>
    %123 = arith.addf %121, %122 : vector<1x128xf32>
    %124 = arith.negf %123 : vector<1x128xf32>
    %125 = math.exp %124 : vector<1x128xf32>
    %cst_31 = arith.constant 1.000000e+00 : f32
    %126 = vector.broadcast %cst_31 : f32 to vector<1x128xf32>
    %127 = arith.addf %126, %125 : vector<1x128xf32>
    %128 = arith.divf %126, %127 : vector<1x128xf32>
    %129 = vector.extract_strided_slice %128 {offsets = [0, 0], sizes = [1, 32], strides = [1, 1]} : vector<1x128xf32> to vector<1x32xf32>
    %130 = vector.extract_strided_slice %128 {offsets = [0, 32], sizes = [1, 32], strides = [1, 1]} : vector<1x128xf32> to vector<1x32xf32>
    %131 = vector.extract_strided_slice %128 {offsets = [0, 64], sizes = [1, 32], strides = [1, 1]} : vector<1x128xf32> to vector<1x32xf32>
    %132 = vector.extract_strided_slice %128 {offsets = [0, 96], sizes = [1, 32], strides = [1, 1]} : vector<1x128xf32> to vector<1x32xf32>
    %cst_32 = arith.constant 2.000000e+00 : f32
    %133 = vector.broadcast %cst_32 : f32 to vector<1x32xf32>
    %134 = arith.mulf %133, %132 : vector<1x32xf32>
    %cst_33 = arith.constant 1.000000e+00 : f32
    %135 = vector.broadcast %cst_33 : f32 to vector<1x32xf32>
    %136 = arith.subf %134, %135 : vector<1x32xf32>
    %137 = arith.mulf %130, %117 : vector<1x32xf32>
    %138 = arith.mulf %129, %136 : vector<1x32xf32>
    %139 = arith.addf %137, %138 : vector<1x32xf32>
    %140 = math.tanh %139 : vector<1x32xf32>
    %141 = arith.mulf %131, %140 : vector<1x32xf32>
    %142 = arith.truncf %141 : vector<1x32xf32> to vector<1x32xbf16>
    %143 = vector.extract_strided_slice %8 {offsets = [6, 0], sizes = [1, 128], strides = [1, 1]} : vector<8x128xf32> to vector<1x128xf32>
    %cst_34 = arith.constant dense<0.000000e+00> : vector<1x128xf32>
    %144 = tpu.matmul %142, %1, %cst_34 {dimension_numbers = #tpu.dot_dimension_numbers<[1], [0], [0], [1], [0, 0, 1, 1], [], []>} : vector<1x32xbf16>, vector<32x128xbf16>, vector<1x128xf32> -> vector<1x128xf32>
    %145 = arith.addf %143, %144 : vector<1x128xf32>
    %146 = arith.negf %145 : vector<1x128xf32>
    %147 = math.exp %146 : vector<1x128xf32>
    %cst_35 = arith.constant 1.000000e+00 : f32
    %148 = vector.broadcast %cst_35 : f32 to vector<1x128xf32>
    %149 = arith.addf %148, %147 : vector<1x128xf32>
    %150 = arith.divf %148, %149 : vector<1x128xf32>
    %151 = vector.extract_strided_slice %150 {offsets = [0, 0], sizes = [1, 32], strides = [1, 1]} : vector<1x128xf32> to vector<1x32xf32>
    %152 = vector.extract_strided_slice %150 {offsets = [0, 32], sizes = [1, 32], strides = [1, 1]} : vector<1x128xf32> to vector<1x32xf32>
    %153 = vector.extract_strided_slice %150 {offsets = [0, 64], sizes = [1, 32], strides = [1, 1]} : vector<1x128xf32> to vector<1x32xf32>
    %154 = vector.extract_strided_slice %150 {offsets = [0, 96], sizes = [1, 32], strides = [1, 1]} : vector<1x128xf32> to vector<1x32xf32>
    %cst_36 = arith.constant 2.000000e+00 : f32
    %155 = vector.broadcast %cst_36 : f32 to vector<1x32xf32>
    %156 = arith.mulf %155, %154 : vector<1x32xf32>
    %cst_37 = arith.constant 1.000000e+00 : f32
    %157 = vector.broadcast %cst_37 : f32 to vector<1x32xf32>
    %158 = arith.subf %156, %157 : vector<1x32xf32>
    %159 = arith.mulf %152, %139 : vector<1x32xf32>
    %160 = arith.mulf %151, %158 : vector<1x32xf32>
    %161 = arith.addf %159, %160 : vector<1x32xf32>
    %162 = math.tanh %161 : vector<1x32xf32>
    %163 = arith.mulf %153, %162 : vector<1x32xf32>
    %164 = arith.truncf %163 : vector<1x32xf32> to vector<1x32xbf16>
    %165 = vector.extract_strided_slice %8 {offsets = [7, 0], sizes = [1, 128], strides = [1, 1]} : vector<8x128xf32> to vector<1x128xf32>
    %cst_38 = arith.constant dense<0.000000e+00> : vector<1x128xf32>
    %166 = tpu.matmul %164, %1, %cst_38 {dimension_numbers = #tpu.dot_dimension_numbers<[1], [0], [0], [1], [0, 0, 1, 1], [], []>} : vector<1x32xbf16>, vector<32x128xbf16>, vector<1x128xf32> -> vector<1x128xf32>
    %167 = arith.addf %165, %166 : vector<1x128xf32>
    %168 = arith.negf %167 : vector<1x128xf32>
    %169 = math.exp %168 : vector<1x128xf32>
    %cst_39 = arith.constant 1.000000e+00 : f32
    %170 = vector.broadcast %cst_39 : f32 to vector<1x128xf32>
    %171 = arith.addf %170, %169 : vector<1x128xf32>
    %172 = arith.divf %170, %171 : vector<1x128xf32>
    %173 = vector.extract_strided_slice %172 {offsets = [0, 0], sizes = [1, 32], strides = [1, 1]} : vector<1x128xf32> to vector<1x32xf32>
    %174 = vector.extract_strided_slice %172 {offsets = [0, 32], sizes = [1, 32], strides = [1, 1]} : vector<1x128xf32> to vector<1x32xf32>
    %175 = vector.extract_strided_slice %172 {offsets = [0, 64], sizes = [1, 32], strides = [1, 1]} : vector<1x128xf32> to vector<1x32xf32>
    %176 = vector.extract_strided_slice %172 {offsets = [0, 96], sizes = [1, 32], strides = [1, 1]} : vector<1x128xf32> to vector<1x32xf32>
    %cst_40 = arith.constant 2.000000e+00 : f32
    %177 = vector.broadcast %cst_40 : f32 to vector<1x32xf32>
    %178 = arith.mulf %177, %176 : vector<1x32xf32>
    %cst_41 = arith.constant 1.000000e+00 : f32
    %179 = vector.broadcast %cst_41 : f32 to vector<1x32xf32>
    %180 = arith.subf %178, %179 : vector<1x32xf32>
    %181 = arith.mulf %174, %161 : vector<1x32xf32>
    %182 = arith.mulf %173, %180 : vector<1x32xf32>
    %183 = arith.addf %181, %182 : vector<1x32xf32>
    %184 = math.tanh %183 : vector<1x32xf32>
    %185 = arith.mulf %175, %184 : vector<1x32xf32>
    %186 = arith.truncf %185 : vector<1x32xf32> to vector<1x32xbf16>
    %187 = tpu.concatenate %32, %54, %76, %98, %120, %142, %164, %186 in 0 : vector<1x32xbf16>, vector<1x32xbf16>, vector<1x32xbf16>, vector<1x32xbf16>, vector<1x32xbf16>, vector<1x32xbf16>, vector<1x32xbf16>, vector<1x32xbf16> -> vector<8x32xbf16>
    %cst_42 = arith.constant dense<0.000000e+00> : vector<8x8xf32>
    %188 = tpu.matmul %187, %2, %cst_42 {dimension_numbers = #tpu.dot_dimension_numbers<[1], [0], [0], [1], [0, 0, 1, 1], [], []>} : vector<8x32xbf16>, vector<32x8xbf16>, vector<8x8xf32> -> vector<8x8xf32>
    %189 = vector.broadcast %4 : vector<1x8xf32> to vector<8x8xf32>
    %190 = arith.addf %188, %189 : vector<8x8xf32>
    %cst_43 = arith.constant dense<0xFF800000> : vector<8xf32>
    %191 = vector.multi_reduction <maximumf>, %190, %cst_43 [0] : vector<8x8xf32> to vector<8xf32>
    %192 = vector.shape_cast %191 : vector<8xf32> to vector<1x8xf32>
    %193 = vector.broadcast %192 : vector<1x8xf32> to vector<8x8xf32>
    %194 = arith.subf %190, %193 : vector<8x8xf32>
    %195 = math.exp %194 : vector<8x8xf32>
    %cst_44 = arith.constant dense<0.000000e+00> : vector<8xf32>
    %196 = vector.multi_reduction <add>, %195, %cst_44 [0] : vector<8x8xf32> to vector<8xf32>
    %197 = vector.shape_cast %196 : vector<8xf32> to vector<1x8xf32>
    %198 = tpu.reciprocal %197 {approx = true} : vector<1x8xf32> -> vector<1x8xf32>
    %199 = vector.broadcast %198 : vector<1x8xf32> to vector<8x8xf32>
    %200 = arith.mulf %195, %199 : vector<8x8xf32>
    %c0_45 = arith.constant 0 : index
    %c0_46 = arith.constant 0 : index
    %201 = vector.load %arg3[%c0_45, %c0_46] : memref<8x8xf32, #tpu.memory_space<vmem>>, vector<8x8xf32>
    tpu.vector_store %arg3[%c0_45, %c0_46], %200 {strides = array<i32>} : memref<8x8xf32, #tpu.memory_space<vmem>>, vector<8x8xf32>,
    return
  }
}

</mosaic_0001>

<bundles_post_ra>
// kernel: tpu_custom_call.1
= control target key start
LH: loop header
LB: loop body
LE: loop exit
PB: predicated region body
PF: predicated region fallthrough
CT: control target
= control target key end

     0   :  { %8 = vsyncpa [#allocation3], 0  ;;  %s1381_s0 = inlined_call_operand.hbm [shape: bf16[8,16], index: 0, kind: input, shape index: {}]   ;;  %s1382_s1 = inlined_call_operand.hbm [shape: bf16[80,128], index: 1, kind: input, shape index: {}]   ;;  %s1383_s2 = inlined_call_operand.vmem [shape: f32[2,128], index: 2, kind: input, shape index: {}]   ;;  %s1384_s3 = inlined_call_operand.hbm [shape: f32[8,8], index: 3, kind: output, shape index: {}]  }
   0x1   :  { %9 = vsyncpa [#allocation6], 0 }
   0x2   :  { %10 = vsyncpa [#allocation4], 0  ;;  %s1163_s12 = smov [#allocation2]   ;;  %s1164_s14 = smov [#allocation5]  }
   0x3   :  { %s17_s13 = sshll.u32 %s1163_s12, 4  ;;  %s26_s15 = sshll.u32 %s1164_s14, 4  ;;  %s18_s13 = int_to_ptr.vmem [resolvable:$true] %s17_s13  ;;  %s1192_s15 = int_to_ptr.vmem [resolvable:$true] %s26_s15 }
   0x4   :  { %s1091_s18 = scalar_lea.hbm %s1381_s0, 64 }
   0x5   :  { %p1092_p0 = scmp.ne.s32.totalorder %s1381_s0, %s1091_s18  ;;  %p1095_p1 = scmp.lt.u32.totalorder %s1091_s18, %s1381_s0 }
   0x7   :  { %p1097_p2 = pnand %p1095_p1, %p1092_p0 }
   0x9   :  { %1100 = shalt.err (!%p1097_p2)
}
   0xa   :  { %s1101_s23 = scalar_lea.vmem %s18_s13, 64  ;;  %p1106_p4 = scmp.lt.s32.totalorder %s18_s13, %s18_s13 }
   0xb   :  { %p1102_p3 = scmp.ne.s32.totalorder %s18_s13, %s1101_s23  ;;  %p1107_p5 = scmp.lt.s32.totalorder %s1101_s23, %s1101_s23 }
   0xd   :  { %p1108_p6 = por %p1107_p5, %p1106_p4 }
   0xf   :  { %p1109_p7 = pnand %p1108_p6, %p1102_p3 }
  0x11   :  { %1112 = shalt.err (!%p1109_p7)
}
  0x12   :  { %20 = dma.hbm_to_vmem [thread:$0]  %s1381_s0, 64, %s18_s13, [#allocation3]  }
  0x13   :  { %s1113_s28 = scalar_lea.hbm %s1382_s1, 640 }
  0x14   :  { %p1114_p8 = scmp.ne.s32.totalorder %s1382_s1, %s1113_s28  ;;  %p1117_p9 = scmp.lt.u32.totalorder %s1113_s28, %s1382_s1 }
  0x16   :  { %p1119_p10 = pnand %p1117_p9, %p1114_p8 }
  0x18   :  { %1122 = shalt.err (!%p1119_p10)
}
  0x19   :  { %s1123_s6 = scalar_lea.vmem %s1192_s15, 640  ;;  %p1128_p12 = scmp.lt.s32.totalorder %s1192_s15, %s1192_s15 }
  0x1a   :  { %p1124_p11 = scmp.ne.s32.totalorder %s1192_s15, %s1123_s6  ;;  %p1129_p13 = scmp.lt.s32.totalorder %s1123_s6, %s1123_s6 }
  0x1c   :  { %p1130_p0 = por %p1129_p13, %p1128_p12 }
  0x1e   :  { %p1131_p1 = pnand %p1130_p0, %p1124_p11 }
  0x20   :  { %1134 = shalt.err (!%p1131_p1)
}
  0x21   :  { %s1165_s0 = smov 64   ;;  %s1166_s7 = smov 4  }
  0x22   :  { %32 = dma.hbm_to_vmem [thread:$0]  %s1382_s1, 640, %s1192_s15, [#allocation6], %s1165_s0, %s1165_s0, %s1166_s7  }
  0x23   :  { %1157 = dma.done.wait [#allocation3], 64  }
  0x24   :  { %1158 = vsyncadd [#allocation3], 4294967232 }
  0x25   :  { %1159 = dma.done.wait [#allocation6], 640  }
  0x26   :  { %1160 = vsyncadd [#allocation6], 4294966656  ;;  %v1167_v0 = vmov 0.0   ;;  %vm1168_vm0 = vmmov 0   ;;  %v1034_v1 = vld [vmem:[#allocation5] sm:$0xff]   ;;  %v1231_v2 = vld [vmem:[#allocation5 + $0x8] sm:$0xff]  }
  0x27   :  { %947 = vmatprep.subr.bf16.mxu0 %v1167_v0  ;;  %953 = vmatprep.subr.bf16.mxu1 %v1167_v0  ;;  %vm65_vm1 = vcmask 130048   ;;  %v54_v3 = vld [vmem:[#allocation2] sm:$0xf]  ;;  %v1234_v4 = vld [vmem:[#allocation5 + $0x10] sm:$0xff]   ;;  %v1169_v5 = vmov 0   ;;  %s1170_s11 = smov 32  }
  0x28   :  { %949 = vmatprep.mubr.msk.bf16.mxu0 %vm1168_vm0, %v1167_v0  ;;  %957 = vmatprep.mubr.msk.bf16.mxu1 %vm1168_vm0, %v1167_v0  ;;  %v886_v6 = vld [vmem:[%s1383_s2] ss:$0 sm:$0xff]  ;;  %vm121_vm2 = vcmask 261120   ;;  %vm756_vm3 = vcmask 1040384   ;;  %vm757_vm4 = vsmask.f32 256 }
  0x29   :  { %948 = vmatpush3.bf16.msra.mxu0 %v1034_v1  ;;  %954 = vmatpush3.bf16.msra.mxu1 %v1231_v2  ;;  %vm758_vm5 = vmand %vm756_vm3, %vm757_vm4  ;;  %vm765_vm6 = vcmask 1041408   ;;  %vm766_vm7 = vsmask.f32 1280  ;;  %vm774_vm9 = vcmask 1042432   ;;  %vm775_vm10 = vsmask.f32 2304 }
  0x2a   :  { %961 = vmatprep.subr.bf16.mxu0 %v1167_v0  ;;  %955 = vmatprep.subr.bf16.mxu1 %v1167_v0  ;;  %vm1304_vm8 = vmand %vm765_vm6, %vm766_vm7  ;;  %vm783_vm12 = vcmask 1043456   ;;  %vm784_vm13 = vsmask.f32 3328  ;;  %vm849_vm15 = vcmask 64512  }
  0x2b   :  { %vm1338_vm11 = vmand %vm774_vm9, %vm775_vm10 }
  0x2c   :  { %950 = vmatmul.mubr.msk.bf16.vlgmr.msra.gmra.mrb[0].mxu0 %vm65_vm1, %v54_v3  ;;  %vm785_vm14 = vmand %vm783_vm12, %vm784_vm13 }
  0x2d   :  { %962 = vmatpush3.bf16.msra.mxu0 %v1231_v2  ;;  %965 = vmatprep.mubr.msk.bf16.mxu0 %vm1168_vm0, %v1167_v0 }
  0x2e   :  { %956 = vmatpush3.bf16.msra.mxu1 %v1234_v4  ;;  %963 = vmatprep.subr.bf16.mxu0 %v1167_v0 }
  0x2f   :  { %969 = vmatprep.subr.bf16.mxu1 %v1167_v0 }
  0x31   :  { %958 = vmatmul.mubr.bf16.vlgmr.msra.gmra.mrb[0].mxu1 %v1169_v5  ;;  %964 = vmatpush3.bf16.msra.mxu0 %v1234_v4 }
  0x32   :  { %970 = vmatpush3.bf16.msra.mxu1 %v1231_v2  ;;  %973 = vmatprep.mubr.msk.bf16.mxu1 %vm1168_vm0, %v1167_v0 }
  0x33   :  { %971 = vmatprep.subr.bf16.mxu1 %v1167_v0  ;;  %977 = vmatprep.subr.bf16.mxu0 %v1167_v0 }
  0x36   :  { %972 = vmatpush3.bf16.msra.mxu1 %v1234_v4 }
  0x37   :  { %985 = vmatprep.subr.bf16.mxu1 %v1167_v0 }
  0xff   :  { %v103_v7 = vpop.f32.mrb[0].mxu0 }
 0x100   :  { %v951_v8 = vpop.f32.mrb[1].mxu0  ;;  %v1255_v9 = vadd.f32 %v886_v6, %v103_v7 }
 0x101   :  { %v106_v10 = vpop.f32.mrb[2].mxu0 }
 0x102   :  { %v952_v11 = vpop.f32.mrb[3].mxu0 }
 0x104   :  { %v159_v12 = vpop.f32.mrb[0].mxu1 }
 0x105   :  { %v165_v13 = vadd.f32 %v159_v12, %v1255_v9  ;;  %v959_v14 = vpop.f32.mrb[1].mxu1 }
 0x106   :  { %v162_v15 = vpop.f32.mrb[2].mxu1 }
 0x107   :  { %v891_v16 = vmul.f32 -1.442695, %v165_v13  ;;  %v960_v17 = vpop.f32.mrb[3].mxu1 }
 0x109   :  { %1039 = vpow2.f32 %v891_v16 }
 0x113   :  { %v1040_v18 = vpop.eup %1039 }
 0x114   :  { %v169_v19 = vadd.f32 1.0, %v1040_v18 }
 0x116   :  { %1041 = vrcp.f32 %v169_v19 }
 0x120   :  { %v1042_v20 = vpop.eup %1041 }
 0x121   :  { %v172_v21 = vmul.f32 2.0, %v1042_v20  ;;  %v174_v25 = vmul.f32 0.0, %v1042_v20 }
 0x123   :  { %v892_v22 = vadd.f32 -1.0, %v172_v21 }
 0x125   :  { %176 = vrot.lane.b32.xlu0 %v892_v22, %s1170_s11 }
 0x197   :  { %v177_v23 = vpop.permute.xlu0 %176 }
 0x198   :  { %v179_v24 = vmul.f32 %v1042_v20, %v177_v23 }
 0x19a   :  { %181 = vrot.lane.b32.xlu0 %v179_v24, %s1170_s11 }
 0x20c   :  { %v182_v26 = vpop.permute.xlu0 %181 }
 0x20d   :  { %v184_v27 = vadd.f32 %v182_v26, %v174_v25 }
 0x20f   :  { %1043 = vtanh.f32 %v184_v27  ;;  %v251_v47 = vrot.slane %v184_v27, 7 }
 0x219   :  { %v1044_v28 = vpop.eup %1043 }
 0x21a   :  { %187 = vrot.lane.b32.xlu1 %v1044_v28, %s1170_s11 }
 0x28c   :  { %v188_v29 = vpop.permute.xlu1 %187 }
 0x28d   :  { %v190_v30 = vmul.f32 %v1042_v20, %v188_v29 }
 0x28f   :  { %v1261_v31 = vpack.c.bf16 %v190_v30, %v190_v30 }
 0x291   :  { %193 = vrot.lane.b32.xlu1 %v1261_v31, %s1165_s0 }
 0x303   :  { %v194_v32 = vpop.permute.xlu1 %193 }
 0x304   :  { %966 = vmatmul.mubr.msk.bf16.vlgmr.msra.gmra.mrb[4].mxu0 %vm121_vm2, %v194_v32 }
 0x305   :  { %978 = vmatpush3.bf16.msra.mxu0 %v1231_v2  ;;  %981 = vmatprep.mubr.msk.bf16.mxu0 %vm1168_vm0, %v1167_v0 }
 0x306   :  { %979 = vmatprep.subr.bf16.mxu0 %v1167_v0 }
 0x309   :  { %980 = vmatpush3.bf16.msra.mxu0 %v1234_v4 }
 0x30a   :  { %993 = vmatprep.subr.bf16.mxu0 %v1167_v0 }
 0x3d7   :  { %v232_v33 = vpop.f32.mrb[4].mxu0 }
 0x3d8   :  { %v239_v34 = vrot.slane %v232_v33, 7  ;;  %v967_v35 = vpop.f32.mrb[5].mxu0 }
 0x3d9   :  { %v235_v36 = vpop.f32.mrb[6].mxu0 }
 0x3da   :  { %v241_v37 = vadd.f32 %v239_v34, %v1255_v9  ;;  %v968_v38 = vpop.f32.mrb[7].mxu0 }
 0x3dc   :  { %v894_v39 = vmul.f32 -1.442695, %v241_v37 }
 0x3de   :  { %1045 = vpow2.f32 %v894_v39 }
 0x3e8   :  { %v1046_v40 = vpop.eup %1045 }
 0x3e9   :  { %v245_v41 = vadd.f32 1.0, %v1046_v40 }
 0x3eb   :  { %1047 = vrcp.f32 %v245_v41 }
 0x3f5   :  { %v1048_v42 = vpop.eup %1047 }
 0x3f6   :  { %v248_v43 = vmul.f32 2.0, %v1048_v42  ;;  %v253_v48 = vmul.f32 %v1048_v42, %v251_v47 }
 0x3f8   :  { %v895_v44 = vadd.f32 -1.0, %v248_v43 }
 0x3fa   :  { %255 = vrot.lane.b32.xlu0 %v895_v44, %s1170_s11 }
 0x46c   :  { %v256_v45 = vpop.permute.xlu0 %255 }
 0x46d   :  { %v258_v46 = vmul.f32 %v1048_v42, %v256_v45 }
 0x46f   :  { %260 = vrot.lane.b32.xlu1 %v258_v46, %s1170_s11 }
 0x4e1   :  { %v261_v49 = vpop.permute.xlu1 %260 }
 0x4e2   :  { %v263_v50 = vadd.f32 %v261_v49, %v253_v48 }
 0x4e4   :  { %1049 = vtanh.f32 %v263_v50  ;;  %v332_v11 = vrot.slane %v263_v50, 7 }
 0x4ee   :  { %v1050_v51 = vpop.eup %1049 }
 0x4ef   :  { %266 = vrot.lane.b32.xlu0 %v1050_v51, %s1170_s11 }
 0x561   :  { %v267_v52 = vpop.permute.xlu0 %266 }
 0x562   :  { %v269_v53 = vmul.f32 %v1048_v42, %v267_v52 }
 0x564   :  { %v270_v54 = vpack.c.bf16 %v269_v53, %v269_v53 }
 0x566   :  { %v272_v55 = vshrl.u32 %v270_v54, 16  ;;  %v759_v19 = vsel %vm758_vm5, %v1261_v31, %v270_v54 }
 0x568   :  { %274 = vrot.lane.b32.xlu1 %v272_v55, %s1165_s0 }
 0x5da   :  { %v275_v56 = vpop.permute.xlu1 %274 }
 0x5db   :  { %974 = vmatmul.mubr.msk.bf16.vlgmr.msra.gmra.mrb[4].mxu1 %vm121_vm2, %v275_v56 }
 0x5dc   :  { %986 = vmatpush3.bf16.msra.mxu1 %v1231_v2  ;;  %989 = vmatprep.mubr.msk.bf16.mxu1 %vm1168_vm0, %v1167_v0 }
 0x5dd   :  { %987 = vmatprep.subr.bf16.mxu1 %v1167_v0 }
 0x5e0   :  { %988 = vmatpush3.bf16.msra.mxu1 %v1234_v4 }
 0x5e1   :  { %1001 = vmatprep.subr.bf16.mxu1 %v1167_v0 }
 0x6ae   :  { %v313_v57 = vpop.f32.mrb[4].mxu1 }
 0x6af   :  { %v320_v58 = vrot.slane %v313_v57, 6  ;;  %v975_v59 = vpop.f32.mrb[5].mxu1 }
 0x6b0   :  { %v316_v60 = vpop.f32.mrb[6].mxu1 }
 0x6b1   :  { %v322_v61 = vadd.f32 %v320_v58, %v1255_v9  ;;  %v976_v62 = vpop.f32.mrb[7].mxu1 }
 0x6b3   :  { %v897_v63 = vmul.f32 -1.442695, %v322_v61 }
 0x6b5   :  { %1051 = vpow2.f32 %v897_v63 }
 0x6bf   :  { %v1052_v1 = vpop.eup %1051 }
 0x6c0   :  { %v326_v3 = vadd.f32 1.0, %v1052_v1 }
 0x6c2   :  { %1053 = vrcp.f32 %v326_v3 }
 0x6cc   :  { %v1054_v5 = vpop.eup %1053 }
 0x6cd   :  { %v329_v6 = vmul.f32 2.0, %v1054_v5  ;;  %v334_v12 = vmul.f32 %v1054_v5, %v332_v11 }
 0x6cf   :  { %v898_v7 = vadd.f32 -1.0, %v329_v6 }
 0x6d1   :  { %336 = vrot.lane.b32.xlu0 %v898_v7, %s1170_s11 }
 0x743   :  { %v337_v8 = vpop.permute.xlu0 %336 }
 0x744   :  { %v339_v10 = vmul.f32 %v1054_v5, %v337_v8 }
 0x746   :  { %341 = vrot.lane.b32.xlu1 %v339_v10, %s1170_s11 }
 0x7b8   :  { %v342_v13 = vpop.permute.xlu1 %341 }
 0x7b9   :  { %v344_v14 = vadd.f32 %v342_v13, %v334_v12 }
 0x7bb   :  { %1055 = vtanh.f32 %v344_v14  ;;  %v412_v37 = vrot.slane %v344_v14, 7 }
 0x7c5   :  { %v1056_v15 = vpop.eup %1055 }
 0x7c6   :  { %347 = vrot.lane.b32.xlu0 %v1056_v15, %s1170_s11 }
 0x838   :  { %v348_v16 = vpop.permute.xlu0 %347 }
 0x839   :  { %v350_v17 = vmul.f32 %v1054_v5, %v348_v16 }
 0x83b   :  { %v351_v18 = vpack.c.bf16 %v350_v17, %v350_v17 }
 0x83d   :  { %v1289_v20 = vsel %vm756_vm3, %v759_v19, %v351_v18  ;;  %v353_v21 = vrot.slane %v351_v18, 1 }
 0x83f   :  { %354 = vrot.lane.b32.xlu1 %v353_v21, %s1165_s0 }
 0x8b1   :  { %v355_v22 = vpop.permute.xlu1 %354 }
 0x8b2   :  { %982 = vmatmul.mubr.msk.bf16.vlgmr.msra.gmra.mrb[8].mxu0 %vm121_vm2, %v355_v22 }
 0x8b3   :  { %994 = vmatpush3.bf16.msra.mxu0 %v1231_v2  ;;  %997 = vmatprep.mubr.msk.bf16.mxu0 %vm1168_vm0, %v1167_v0 }
 0x8b4   :  { %995 = vmatprep.subr.bf16.mxu0 %v1167_v0 }
 0x8b7   :  { %996 = vmatpush3.bf16.msra.mxu0 %v1234_v4 }
 0x8b8   :  { %1009 = vmatprep.subr.bf16.mxu0 %v1167_v0 }
 0x985   :  { %v393_v23 = vpop.f32.mrb[8].mxu0 }
 0x986   :  { %v400_v24 = vrot.slane %v393_v23, 5  ;;  %v983_v25 = vpop.f32.mrb[9].mxu0 }
 0x987   :  { %v396_v26 = vpop.f32.mrb[10].mxu0 }
 0x988   :  { %v402_v27 = vadd.f32 %v400_v24, %v1255_v9  ;;  %v984_v28 = vpop.f32.mrb[11].mxu0 }
 0x98a   :  { %v900_v29 = vmul.f32 -1.442695, %v402_v27 }
 0x98c   :  { %1057 = vpow2.f32 %v900_v29 }
 0x996   :  { %v1058_v30 = vpop.eup %1057 }
 0x997   :  { %v406_v31 = vadd.f32 1.0, %v1058_v30 }
 0x999   :  { %1059 = vrcp.f32 %v406_v31 }
 0x9a3   :  { %v1060_v32 = vpop.eup %1059 }
 0x9a4   :  { %v409_v33 = vmul.f32 2.0, %v1060_v32  ;;  %v414_v38 = vmul.f32 %v1060_v32, %v412_v37 }
 0x9a6   :  { %v901_v34 = vadd.f32 -1.0, %v409_v33 }
 0x9a8   :  { %416 = vrot.lane.b32.xlu0 %v901_v34, %s1170_s11 }
 0xa1a   :  { %v417_v35 = vpop.permute.xlu0 %416 }
 0xa1b   :  { %v419_v36 = vmul.f32 %v1060_v32, %v417_v35 }
 0xa1d   :  { %421 = vrot.lane.b32.xlu1 %v419_v36, %s1170_s11 }
 0xa8f   :  { %v422_v39 = vpop.permute.xlu1 %421 }
 0xa90   :  { %v424_v40 = vadd.f32 %v422_v39, %v414_v38 }
 0xa92   :  { %1061 = vtanh.f32 %v424_v40  ;;  %v494_v1 = vrot.slane %v424_v40, 7 }
 0xa9c   :  { %v1062_v41 = vpop.eup %1061 }
 0xa9d   :  { %427 = vrot.lane.b32.xlu0 %v1062_v41, %s1170_s11 }
 0xb0f   :  { %v428_v42 = vpop.permute.xlu0 %427 }
 0xb10   :  { %v430_v43 = vmul.f32 %v1060_v32, %v428_v42 }
 0xb12   :  { %v431_v45 = vpack.c.bf16 %v430_v43, %v430_v43 }
 0xb14   :  { %v768_v46 = vsel %vm1304_vm8, %v1289_v20, %v431_v45  ;;  %v433_v47 = vshrl.u32 %v431_v45, 16 }
 0xb16   :  { %v435_v48 = vrot.slane %v433_v47, 1 }
 0xb18   :  { %436 = vrot.lane.b32.xlu1 %v435_v48, %s1165_s0 }
 0xb8a   :  { %v437_v49 = vpop.permute.xlu1 %436 }
 0xb8b   :  { %990 = vmatmul.mubr.msk.bf16.vlgmr.msra.gmra.mrb[8].mxu1 %vm121_vm2, %v437_v49 }
 0xb8c   :  { %1002 = vmatpush3.bf16.msra.mxu1 %v1231_v2  ;;  %1005 = vmatprep.mubr.msk.bf16.mxu1 %vm1168_vm0, %v1167_v0 }
 0xb8d   :  { %1003 = vmatprep.subr.bf16.mxu1 %v1167_v0 }
 0xb90   :  { %1004 = vmatpush3.bf16.msra.mxu1 %v1234_v4 }
 0xb91   :  { %1017 = vmatprep.subr.bf16.mxu1 %v1167_v0 }
 0xc5e   :  { %v475_v50 = vpop.f32.mrb[8].mxu1 }
 0xc5f   :  { %v482_v51 = vrot.slane %v475_v50, 4  ;;  %v991_v52 = vpop.f32.mrb[9].mxu1 }
 0xc60   :  { %v478_v53 = vpop.f32.mrb[10].mxu1 }
 0xc61   :  { %v484_v54 = vadd.f32 %v482_v51, %v1255_v9  ;;  %v992_v55 = vpop.f32.mrb[11].mxu1 }
 0xc63   :  { %v903_v56 = vmul.f32 -1.442695, %v484_v54 }
 0xc65   :  { %1063 = vpow2.f32 %v903_v56 }
 0xc6f   :  { %v1064_v57 = vpop.eup %1063 }
 0xc70   :  { %v488_v58 = vadd.f32 1.0, %v1064_v57 }
 0xc72   :  { %1065 = vrcp.f32 %v488_v58 }
 0xc7c   :  { %v1066_v59 = vpop.eup %1065 }
 0xc7d   :  { %v491_v60 = vmul.f32 2.0, %v1066_v59  ;;  %v496_v3 = vmul.f32 %v1066_v59, %v494_v1 }
 0xc7f   :  { %v904_v61 = vadd.f32 -1.0, %v491_v60 }
 0xc81   :  { %498 = vrot.lane.b32.xlu0 %v904_v61, %s1170_s11 }
 0xcf3   :  { %v499_v62 = vpop.permute.xlu0 %498 }
 0xcf4   :  { %v501_v63 = vmul.f32 %v1066_v59, %v499_v62 }
 0xcf6   :  { %503 = vrot.lane.b32.xlu1 %v501_v63, %s1170_s11 }
 0xd68   :  { %v504_v5 = vpop.permute.xlu1 %503 }
 0xd69   :  { %v506_v6 = vadd.f32 %v504_v5, %v496_v3 }
 0xd6b   :  { %1067 = vtanh.f32 %v506_v6 }
 0xd75   :  { %v1068_v7 = vpop.eup %1067 }
 0xd76   :  { %509 = vrot.lane.b32.xlu0 %v1068_v7, %s1170_s11 }
 0xde8   :  { %v510_v8 = vpop.permute.xlu0 %509 }
 0xde9   :  { %v512_v10 = vmul.f32 %v1066_v59, %v510_v8 }
 0xdeb   :  { %v513_v11 = vpack.c.bf16 %v512_v10, %v512_v10 }
 0xded   :  { %v1324_v12 = vsel %vm765_vm6, %v768_v46, %v513_v11  ;;  %v515_v13 = vrot.slane %v513_v11, 2 }
 0xdef   :  { %516 = vrot.lane.b32.xlu1 %v515_v13, %s1165_s0 }
 0xe61   :  { %v517_v14 = vpop.permute.xlu1 %516 }
 0xe62   :  { %998 = vmatmul.mubr.msk.bf16.vlgmr.msra.gmra.mrb[12].mxu0 %vm121_vm2, %v517_v14 }
 0xe63   :  { %1010 = vmatpush3.bf16.msra.mxu0 %v1231_v2  ;;  %1013 = vmatprep.mubr.msk.bf16.mxu0 %vm1168_vm0, %v1167_v0 }
 0xe64   :  { %1011 = vmatprep.subr.bf16.mxu0 %v1167_v0 }
 0xe67   :  { %1012 = vmatpush3.bf16.msra.mxu0 %v1234_v4  ;;  %v574_v4 = vrot.slane %v506_v6, 7 }
 0xf35   :  { %v555_v15 = vpop.f32.mrb[12].mxu0 }
 0xf36   :  { %v562_v16 = vrot.slane %v555_v15, 3  ;;  %v999_v17 = vpop.f32.mrb[13].mxu0 }
 0xf37   :  { %v558_v18 = vpop.f32.mrb[14].mxu0 }
 0xf38   :  { %v564_v19 = vadd.f32 %v562_v16, %v1255_v9  ;;  %v1000_v20 = vpop.f32.mrb[15].mxu0 }
 0xf3a   :  { %v906_v21 = vmul.f32 -1.442695, %v564_v19 }
 0xf3c   :  { %1069 = vpow2.f32 %v906_v21 }
 0xf46   :  { %v1070_v22 = vpop.eup %1069 }
 0xf47   :  { %v568_v23 = vadd.f32 1.0, %v1070_v22 }
 0xf49   :  { %1071 = vrcp.f32 %v568_v23  ;;  %v1038_v23 = vld [vmem:[#allocation5 + $0x20] sm:$0xff]  }
 0xf53   :  { %v1072_v2 = vpop.eup %1071 }
 0xf54   :  { %v571_v24 = vmul.f32 2.0, %v1072_v2  ;;  %v576_v28 = vmul.f32 %v1072_v2, %v574_v4 }
 0xf56   :  { %v907_v25 = vadd.f32 -1.0, %v571_v24 }
 0xf58   :  { %578 = vrot.lane.b32.xlu0 %v907_v25, %s1170_s11 }
 0xfca   :  { %v579_v26 = vpop.permute.xlu0 %578 }
 0xfcb   :  { %v581_v27 = vmul.f32 %v1072_v2, %v579_v26 }
 0xfcd   :  { %583 = vrot.lane.b32.xlu1 %v581_v27, %s1170_s11 }
0x103f   :  { %v584_v29 = vpop.permute.xlu1 %583 }
0x1040   :  { %v586_v30 = vadd.f32 %v584_v29, %v576_v28 }
0x1042   :  { %1073 = vtanh.f32 %v586_v30  ;;  %v656_v54 = vrot.slane %v586_v30, 7 }
0x104c   :  { %v1074_v31 = vpop.eup %1073 }
0x104d   :  { %589 = vrot.lane.b32.xlu0 %v1074_v31, %s1170_s11 }
0x10bf   :  { %v590_v32 = vpop.permute.xlu0 %589 }
0x10c0   :  { %v592_v33 = vmul.f32 %v1072_v2, %v590_v32 }
0x10c2   :  { %v593_v35 = vpack.c.bf16 %v592_v33, %v592_v33 }
0x10c4   :  { %v595_v36 = vshrl.u32 %v593_v35, 16  ;;  %v777_v37 = vsel %vm1338_vm11, %v1324_v12, %v593_v35 }
0x10c6   :  { %v597_v38 = vrot.slane %v595_v36, 2 }
0x10c8   :  { %598 = vrot.lane.b32.xlu1 %v597_v38, %s1165_s0 }
0x113a   :  { %v599_v39 = vpop.permute.xlu1 %598 }
0x113b   :  { %1006 = vmatmul.mubr.msk.bf16.vlgmr.msra.gmra.mrb[12].mxu1 %vm121_vm2, %v599_v39 }
0x113c   :  { %1021 = vmatprep.mubr.msk.bf16.mxu1 %vm1168_vm0, %v1167_v0 }
0x120e   :  { %v637_v40 = vpop.f32.mrb[12].mxu1 }
0x120f   :  { %v644_v41 = vrot.slane %v637_v40, 2  ;;  %v1007_v42 = vpop.f32.mrb[13].mxu1 }
0x1210   :  { %v640_v43 = vpop.f32.mrb[14].mxu1 }
0x1211   :  { %v646_v44 = vadd.f32 %v644_v41, %v1255_v9  ;;  %v1008_v45 = vpop.f32.mrb[15].mxu1 }
0x1213   :  { %v909_v46 = vmul.f32 -1.442695, %v646_v44 }
0x1215   :  { %1075 = vpow2.f32 %v909_v46 }
0x121f   :  { %v1076_v47 = vpop.eup %1075 }
0x1220   :  { %v650_v48 = vadd.f32 1.0, %v1076_v47 }
0x1222   :  { %1077 = vrcp.f32 %v650_v48 }
0x122c   :  { %v1078_v49 = vpop.eup %1077 }
0x122d   :  { %v653_v50 = vmul.f32 2.0, %v1078_v49  ;;  %v658_v55 = vmul.f32 %v1078_v49, %v656_v54 }
0x122f   :  { %v910_v51 = vadd.f32 -1.0, %v653_v50 }
0x1231   :  { %660 = vrot.lane.b32.xlu0 %v910_v51, %s1170_s11 }
0x12a3   :  { %v661_v52 = vpop.permute.xlu0 %660 }
0x12a4   :  { %v663_v53 = vmul.f32 %v1078_v49, %v661_v52 }
0x12a6   :  { %665 = vrot.lane.b32.xlu1 %v663_v53, %s1170_s11 }
0x1318   :  { %v666_v56 = vpop.permute.xlu1 %665 }
0x1319   :  { %v668_v57 = vadd.f32 %v666_v56, %v658_v55 }
0x131b   :  { %1079 = vtanh.f32 %v668_v57  ;;  %v736_v19 = vrot.slane %v668_v57, 7 }
0x1325   :  { %v1080_v58 = vpop.eup %1079 }
0x1326   :  { %671 = vrot.lane.b32.xlu0 %v1080_v58, %s1170_s11 }
0x1398   :  { %v672_v59 = vpop.permute.xlu0 %671 }
0x1399   :  { %v674_v60 = vmul.f32 %v1078_v49, %v672_v59 }
0x139b   :  { %v675_v61 = vpack.c.bf16 %v674_v60, %v674_v60 }
0x139d   :  { %v677_v62 = vrot.slane %v675_v61, 3  ;;  %v781_v63 = vsel %vm774_vm9, %v777_v37, %v675_v61 }
0x139f   :  { %678 = vrot.lane.b32.xlu1 %v677_v62, %s1165_s0 }
0x1411   :  { %v679_v1 = vpop.permute.xlu1 %678 }
0x1412   :  { %1014 = vmatmul.mubr.msk.bf16.vlgmr.msra.gmra.mrb[16].mxu0 %vm121_vm2, %v679_v1 }
0x14e5   :  { %v717_v3 = vpop.f32.mrb[16].mxu0 }
0x14e6   :  { %v724_v5 = vrot.slane %v717_v3, 1  ;;  %v1015_v6 = vpop.f32.mrb[17].mxu0 }
0x14e7   :  { %v720_v7 = vpop.f32.mrb[18].mxu0 }
0x14e8   :  { %v726_v8 = vadd.f32 %v724_v5, %v1255_v9  ;;  %v1016_v10 = vpop.f32.mrb[19].mxu0  ;;  %v1037_v9 = vld [vmem:[#allocation5 + $0x18] sm:$0xff]  }
0x14e9   :  { %1018 = vmatpush3.bf16.msra.mxu1 %v1037_v9 }
0x14ea   :  { %v912_v11 = vmul.f32 -1.442695, %v726_v8  ;;  %1019 = vmatprep.subr.bf16.mxu1 %v1167_v0  ;;  %v914_v0 = vld [vmem:[%s1383_s2 + $0x1] ss:$0 sm:$0xff]  ;;  %s1171_s2 = smov [#allocation7]  }
0x14eb   :  { %s876_s14 = sshll.u32 %s1171_s2, 4  ;;  %s877_s14 = int_to_ptr.vmem [resolvable:$true] %s876_s14 }
0x14ec   :  { %1081 = vpow2.f32 %v912_v11  ;;  %s1135_s15 = scalar_lea.vmem %s877_s14, 128  ;;  %p1140_p3 = scmp.lt.s32.totalorder %s877_s14, %s877_s14 }
0x14ed   :  { %1020 = vmatpush3.bf16.msra.mxu1 %v1038_v23  ;;  %p1136_p2 = scmp.ne.s32.totalorder %s877_s14, %s1135_s15  ;;  %p1141_p4 = scmp.lt.s32.totalorder %s1135_s15, %s1135_s15 }
0x14ef   :  { %p1142_p5 = por %p1141_p4, %p1140_p3 }
0x14f1   :  { %p1143_p6 = pnand %p1142_p5, %p1136_p2 }
0x14f6   :  { %v1082_v12 = vpop.eup %1081 }
0x14f7   :  { %v730_v13 = vadd.f32 1.0, %v1082_v12 }
0x14f9   :  { %1083 = vrcp.f32 %v730_v13 }
0x1503   :  { %v1084_v14 = vpop.eup %1083 }
0x1504   :  { %v733_v15 = vmul.f32 2.0, %v1084_v14  ;;  %v738_v20 = vmul.f32 %v1084_v14, %v736_v19 }
0x1506   :  { %v913_v16 = vadd.f32 -1.0, %v733_v15 }
0x1508   :  { %740 = vrot.lane.b32.xlu0 %v913_v16, %s1170_s11 }
0x157a   :  { %v741_v17 = vpop.permute.xlu0 %740 }
0x157b   :  { %v743_v18 = vmul.f32 %v1084_v14, %v741_v17 }
0x157d   :  { %745 = vrot.lane.b32.xlu1 %v743_v18, %s1170_s11 }
0x15ef   :  { %v746_v21 = vpop.permute.xlu1 %745 }
0x15f0   :  { %v748_v22 = vadd.f32 %v746_v21, %v738_v20 }
0x15f2   :  { %1085 = vtanh.f32 %v748_v22 }
0x15fc   :  { %v1086_v2 = vpop.eup %1085 }
0x15fd   :  { %751 = vrot.lane.b32.xlu0 %v1086_v2, %s1170_s11 }
0x166f   :  { %v752_v24 = vpop.permute.xlu0 %751 }
0x1670   :  { %v754_v25 = vmul.f32 %v1084_v14, %v752_v24 }
0x1672   :  { %v755_v26 = vpack.c.bf16 %v754_v25, %v754_v25 }
0x1674   :  { %v786_v27 = vsel %vm785_vm14, %v781_v63, %v755_v26 }
0x1675   :  { %792 = vrot.lane.b32.xlu1 %v786_v27, %s1165_s0 }
0x16e7   :  { %v793_v4 = vpop.permute.xlu1 %792 }
0x16e8   :  { %1022 = vmatmul.mubr.msk.bf16.vlgmr.msra.gmra.mrb[16].mxu1 %vm121_vm2, %v793_v4 }
0x17bb   :  { %v843_v28 = vpop.f32.mrb[16].mxu1 }
0x17bc   :  { %v844_v29 = vadd.f32 %v914_v0, %v843_v28  ;;  %v1023_v30 = vpop.f32.mrb[17].mxu1 }
0x17bd   :  { %v846_v31 = vpop.f32.mrb[18].mxu1 }
0x17be   :  { %v850_v32 = vsel %vm849_vm15, %v844_v29, -inf  ;;  %v1024_v33 = vpop.f32.mrb[19].mxu1 }
0x17bf   :  { %v851_v34 = vrot.slane %v850_v32, 4 }
0x17c1   :  { %v852_v35 = vmax.f32 %v850_v32, %v851_v34 }
0x17c3   :  { %v853_v36 = vrot.slane %v852_v35, 2 }
0x17c5   :  { %v854_v37 = vmax.f32 %v852_v35, %v853_v36 }
0x17c7   :  { %v855_v38 = vrot.slane %v854_v37, 1 }
0x17c9   :  { %v856_v39 = vmax.f32 %v854_v37, %v855_v38 }
0x17cb   :  { %v857_v40 = vsub.f32 %v844_v29, %v856_v39 }
0x17cd   :  { %v858_v41 = vmul.f32 1.442695, %v857_v40 }
0x17cf   :  { %1087 = vpow2.f32 %v858_v41 }
0x17d9   :  { %v1088_v42 = vpop.eup %1087 }
0x17da   :  { %v860_v43 = vsel %vm849_vm15, %v1088_v42, 0.0 }
0x17db   :  { %v861_v44 = vrot.slane %v860_v43, 4 }
0x17dd   :  { %v862_v45 = vadd.f32 %v861_v44, %v860_v43 }
0x17df   :  { %v863_v46 = vrot.slane %v862_v45, 2 }
0x17e1   :  { %v864_v47 = vadd.f32 %v863_v46, %v862_v45 }
0x17e3   :  { %v865_v48 = vrot.slane %v864_v47, 1 }
0x17e5   :  { %v866_v49 = vadd.f32 %v865_v48, %v864_v47 }
0x17e7   :  { %1089 = vrcp.f32 %v866_v49 }
0x17f1   :  { %v1090_v50 = vpop.eup %1089 }
0x17f2   :  { %v868_v51 = vmul.f32 %v1090_v50, %v1088_v42 }
0x17f4   :  { %869 = vst.msk [vmem:[#allocation7] sm:$0xff] %vm849_vm15, %v868_v51 }
0x17f5   :  { %1146 = shalt.err (!%p1143_p6)
}
0x17f6   :  { %s1147_s18 = scalar_lea.hbm %s1384_s3, 128 }
0x17f7   :  { %p1148_p7 = scmp.ne.s32.totalorder %s1384_s3, %s1147_s18  ;;  %p1151_p8 = scmp.lt.u32.totalorder %s1147_s18, %s1384_s3 }
0x17f9   :  { %p1153_p9 = pnand %p1151_p8, %p1148_p7 }
0x17fb   :  { %1156 = shalt.err (!%p1153_p9)
}
0x17fc   :  { %879 = dma.vmem_to_hbm [thread:$0]  %s877_s14, 128, %s1384_s3, [#allocation4]  }
0x17fd   :  { %1161 = dma.done.wait [#allocation4], 128  }
0x17fe   :  { %1162 = vsyncadd [#allocation4], 4294967168 }
0x17ff   :  { %883 = vsyncpa [#allocation3], 1 }
0x1800   :  { %884 = vsyncpa [#allocation6], 1 }
0x1801   :  { %885 = vsyncpa [#allocation4], 1 }

</bundles_post_ra>
